<compile_context>
chip_gen: v7x
topology: tpu7x:2x2x1
jax: 0.10.0
libtpu: 0.0.40
codegen_flags: <defaults>
</compile_context>

<pallas_src>
import functools

import jax
import jax.numpy as jnp
from jax import lax
from jax.experimental import pallas as pl
from jax.experimental.pallas import tpu as pltpu

_LANES = 128
_SUBLANES = 8


def _round_up(x, m):
    return ((x + m - 1) // m) * m


def _jetx_loss_kernel(n_ref, v_ref, p_ref, c_ref, t_ref, out_ref, acc_ref,
                      *, threshold, crash_weight, alpha, tile_rows):
    """One (tile_rows, 128) tile per grid step; per-lane partials in acc_ref."""
    step = pl.program_id(0)

    @pl.when(step == 0)
    def _():
        acc_ref[...] = jnp.zeros_like(acc_ref)

    n = n_ref[0]                 # true element count (SMEM scalar)

    v = v_ref[...]               # (tile_rows, 128) f32
    p = p_ref[...]               # probabilities in (0, 1]
    c = c_ref[...]               # probabilities in [0, 1)
    t = t_ref[...]

    # value loss contribution (MSE numerator)
    diff = v - t
    sq = diff * diff

    # Threshold mask computed once and reused everywhere.
    mask = t >= threshold                       # True  -> threshold_target = 1
                                                # False -> crash_target = 1
    # Select-before-log BCE (targets are strictly 0/1), with PyTorch's -100
    # clamp on the log term.  Halves the EUP log count vs. computing both logs.
    bce_thr = -jnp.maximum(jnp.log(jnp.where(mask, p, 1.0 - p)), -100.0)
    bce_crash = -jnp.maximum(jnp.log(jnp.where(mask, 1.0 - c, c)), -100.0)
    w = jnp.where(mask, 1.0, crash_weight)      # crash_target==1 -> crash_weight

    # Fused per-element total so only ONE reduction is needed.
    c_bce = (1.0 - alpha) * 0.5
    per_elem = alpha * sq + c_bce * (bce_thr + w * bce_crash)

    # Mask off the ragged tail: padded sub-row elements AND undefined rows of
    # the clipped edge block both get exactly 0 (where selects, so any NaN/inf
    # produced from garbage never propagates).
    row_idx = lax.broadcasted_iota(jnp.int32, (tile_rows, _LANES), 0)
    lane_idx = lax.broadcasted_iota(jnp.int32, (tile_rows, _LANES), 1)
    elem_idx = (step * tile_rows + row_idx) * _LANES + lane_idx
    per_elem = jnp.where(elem_idx < n, per_elem, 0.0)

    # Fold the tile down to an (8, 128) per-lane partial with pure VPU adds.
    partial = per_elem.reshape(tile_rows // _SUBLANES, _SUBLANES, _LANES).sum(axis=0)
    acc_ref[...] += partial

    # Epilogue: single cross-lane (XLU) reduce + exact 1/N scale, once.
    @pl.when(step == pl.num_programs(0) - 1)
    def _():
        out_ref[0, 0] = jnp.sum(acc_ref[...]) / n.astype(jnp.float32)


def jetx_threshold_loss(predictions, targets, threshold=1.5, crash_weight=2.0,
                        alpha=0.7, *, tile_rows=2048):
    """JAX/Pallas equivalent of JetXThresholdLoss.forward.

    predictions: dict with 'value', 'probability', 'crash_risk' (each (N, 1) or
    (N,)); 'confidence' is unused (as in the PyTorch forward).
    targets: (N,) array.
    """
    threshold = float(threshold)
    crash_weight = float(crash_weight)
    alpha = float(alpha)

    def flat(x):
        return jnp.reshape(jnp.asarray(x, jnp.float32), (-1,))

    v = flat(predictions["value"])
    p = flat(predictions["probability"])
    c = flat(predictions["crash_risk"])
    t = flat(targets)

    n = t.shape[0]
    rows = pl.cdiv(n, _LANES)
    padded_n = rows * _LANES

    # tile_rows: multiple of 8, clamped to the (8-rounded) row count so tiny
    # batches use a single small tile instead of streaming garbage rows.
    tile_rows = max(_SUBLANES,
                    min(_round_up(int(tile_rows), _SUBLANES),
                        _round_up(rows, _SUBLANES)))
    steps = pl.cdiv(rows, tile_rows)

    # Minimal padding: only up to the next multiple of 128 (zero extra HBM
    # traffic when N is already 128-aligned — the reshape is a bitcast).
    # Pad values only need to be numerically harmless; they are masked
    # in-kernel via the elem_idx < N test.
    def slab(x, fill):
        if padded_n != n:
            x = jnp.pad(x, (0, padded_n - n), constant_values=fill)
        return x.reshape(rows, _LANES)

    v2 = slab(v, 0.0)
    p2 = slab(p, 0.5)
    c2 = slab(c, 0.5)
    t2 = slab(t, 0.0)

    n_arr = jnp.array([n], dtype=jnp.int32)

    kernel = functools.partial(
        _jetx_loss_kernel,
        threshold=threshold,
        crash_weight=crash_weight,
        alpha=alpha,
        tile_rows=tile_rows,
    )

    # index_map receives (grid index, scalar-prefetch ref) positionally.
    data_spec = pl.BlockSpec((tile_rows, _LANES), lambda i, n_sm: (i, 0))

    # TODO(synk): on v7x (2 TCs/chip) a leading CORE_PARALLEL shard axis could
    # engage both TensorCores' DMA engines; left as a single serial grid here
    # since v5e/v6e have one TC and gain nothing from it.
    out = pl.pallas_call(
        kernel,
        out_shape=jax.ShapeDtypeStruct((1, 1), jnp.float32),
        grid_spec=pltpu.PrefetchScalarGridSpec(
            num_scalar_prefetch=1,
            grid=(steps,),
            in_specs=[data_spec, data_spec, data_spec, data_spec],
            out_specs=pl.BlockSpec(memory_space=pltpu.MemorySpace.SMEM),
            scratch_shapes=[pltpu.VMEM((_SUBLANES, _LANES), jnp.float32)],
        ),
        compiler_params=pltpu.CompilerParams(
            dimension_semantics=("arbitrary",),
            vmem_limit_bytes=32 * 1024 * 1024,
        ),
    )(n_arr, v2, p2, c2, t2)

    return out[0, 0]


def _bce_elementwise(pred, tgt):
    """Element-wise BCE with PyTorch's log clamp at -100 (reference only)."""
    log_p = jnp.maximum(jnp.log(pred), -100.0)
    log_1mp = jnp.maximum(jnp.log(1.0 - pred), -100.0)
    return -(tgt * log_p + (1.0 - tgt) * log_1mp)


def _reference_loss(predictions, targets, threshold=1.5, crash_weight=2.0,
                    alpha=0.7):
    """Pure-JAX reference for sanity checking."""
    v = jnp.squeeze(predictions["value"]).astype(jnp.float32)
    p = jnp.squeeze(predictions["probability"]).astype(jnp.float32)
    c = jnp.squeeze(predictions["crash_risk"]).astype(jnp.float32)
    t = jnp.asarray(targets, jnp.float32)

    value_loss = jnp.mean((v - t) ** 2)
    thr_t = (t >= threshold).astype(jnp.float32)
    threshold_loss = jnp.mean(_bce_elementwise(p, thr_t))
    crash_t = (t < threshold).astype(jnp.float32)
    w = jnp.where(crash_t == 1.0, crash_weight, 1.0)
    weighted_crash = jnp.mean(w * _bce_elementwise(c, crash_t))
    return (alpha * value_loss
            + (1 - alpha) * 0.5 * threshold_loss
            + (1 - alpha) * 0.5 * weighted_crash)


def _make_inputs(key, n):
    k1, k2, k3, k4 = jax.random.split(key, 4)
    targets = 1.0 + 2.0 * jax.random.uniform(k1, (n,), dtype=jnp.float32)
    predictions = {
        "value": 1.0 + 2.0 * jax.random.uniform(k2, (n, 1), dtype=jnp.float32),
        "probability": jax.nn.sigmoid(
            jax.random.normal(k3, (n, 1), dtype=jnp.float32)),
        "confidence": jnp.full((n, 1), 0.5, jnp.float32),  # unused in forward
        "crash_risk": jax.nn.sigmoid(
            jax.random.normal(k4, (n, 1), dtype=jnp.float32)),
    }
    return predictions, targets


if __name__ == "__main__":
    key = jax.random.PRNGKey(0)
    k_a, k_b = jax.random.split(key)

    # Case 1: small, non-128-aligned batch (exercises the minimal-pad +
    # clipped-edge-block + element-mask path, single grid step).
    preds_a, tgt_a = _make_inputs(k_a, 200)
    loss_a = jax.block_until_ready(jetx_threshold_loss(preds_a, tgt_a))
    ref_a = _reference_loss(preds_a, tgt_a)
    assert jnp.allclose(loss_a, ref_a, rtol=1e-5, atol=1e-5), (loss_a, ref_a)

    # Case 2: multi-step grid with a forced small tile (exercises the
    # accumulator init / steady-state / epilogue phases across steps).
    preds_b, tgt_b = _make_inputs(k_b, 3000)
    loss_b = jax.block_until_ready(
        jetx_threshold_loss(preds_b, tgt_b, tile_rows=8))
    ref_b = _reference_loss(preds_b, tgt_b)
    assert jnp.allclose(loss_b, ref_b, rtol=1e-5, atol=1e-5), (loss_b, ref_b)

    print("KERNEL_OK")
</pallas_src>

<mosaic_0001>
module attributes {stable_mosaic.version = 11 : i64} {
  func.func @_jetx_loss_kernel(%arg0: i32, %arg1: memref<1xi32, #tpu.memory_space<smem>>, %arg2: memref<8x128xf32, #tpu.memory_space<vmem>>, %arg3: memref<8x128xf32, #tpu.memory_space<vmem>>, %arg4: memref<8x128xf32, #tpu.memory_space<vmem>>, %arg5: memref<8x128xf32, #tpu.memory_space<vmem>>, %arg6: memref<1x1xf32, #tpu.memory_space<smem>>, %arg7: memref<8x128xf32, #tpu.memory_space<vmem>>) attributes {dimension_semantics = [#tpu.dimension_semantics<arbitrary>], iteration_bounds = array<i64: 1>, scalar_prefetch = 1 : i64, scratch_operands = 1 : i64, tpu.core_type = #tpu.core_type<tc>, window_params = [{transform_indices = @transform_0, window_bounds = array<i64: 8, 128>}, {transform_indices = @transform_1, window_bounds = array<i64: 8, 128>}, {transform_indices = @transform_2, window_bounds = array<i64: 8, 128>}, {transform_indices = @transform_3, window_bounds = array<i64: 8, 128>}, {transform_indices = @transform_4, window_bounds = array<i64: 1, 1>}]} {
    %c0_i32 = arith.constant 0 : i32
    %0 = arith.cmpi eq, %arg0, %c0_i32 : i32
    %1 = arith.extui %0 : i1 to i32
    %c0_i32_0 = arith.constant 0 : i32
    %2 = arith.cmpi ne, %1, %c0_i32_0 : i32
    scf.if %2 {
      %cst_27 = arith.constant 0.000000e+00 : f32
      %58 = vector.broadcast %cst_27 : f32 to vector<8x128xf32>
      %c0_28 = arith.constant 0 : index
      %c0_29 = arith.constant 0 : index
      %59 = vector.load %arg7[%c0_28, %c0_29] : memref<8x128xf32, #tpu.memory_space<vmem>>, vector<8x128xf32>
      tpu.vector_store %arg7[%c0_28, %c0_29], %58 {strides = array<i32>} : memref<8x128xf32, #tpu.memory_space<vmem>>, vector<8x128xf32>,
    } else {
    }
    %c0 = arith.constant 0 : index
    %3 = memref.load %arg1[%c0] : memref<1xi32, #tpu.memory_space<smem>>
    %c0_1 = arith.constant 0 : index
    %c0_2 = arith.constant 0 : index
    %4 = vector.load %arg2[%c0_1, %c0_2] : memref<8x128xf32, #tpu.memory_space<vmem>>, vector<8x128xf32>
    %c0_3 = arith.constant 0 : index
    %c0_4 = arith.constant 0 : index
    %5 = vector.load %arg3[%c0_3, %c0_4] : memref<8x128xf32, #tpu.memory_space<vmem>>, vector<8x128xf32>
    %c0_5 = arith.constant 0 : index
    %c0_6 = arith.constant 0 : index
    %6 = vector.load %arg4[%c0_5, %c0_6] : memref<8x128xf32, #tpu.memory_space<vmem>>, vector<8x128xf32>
    %c0_7 = arith.constant 0 : index
    %c0_8 = arith.constant 0 : index
    %7 = vector.load %arg5[%c0_7, %c0_8] : memref<8x128xf32, #tpu.memory_space<vmem>>, vector<8x128xf32>
    %8 = arith.subf %4, %7 : vector<8x128xf32>
    %9 = arith.mulf %8, %8 : vector<8x128xf32>
    %cst = arith.constant 1.500000e+00 : f32
    %10 = vector.broadcast %cst : f32 to vector<8x128xf32>
    %11 = arith.cmpf oge, %7, %10 : vector<8x128xf32>
    %cst_9 = arith.constant 1.000000e+00 : f32
    %12 = vector.broadcast %cst_9 : f32 to vector<8x128xf32>
    %13 = arith.subf %12, %5 : vector<8x128xf32>
    %14 = arith.select %11, %5, %13 : vector<8x128xi1>, vector<8x128xf32>
    %15 = math.log %14 : vector<8x128xf32>
    %cst_10 = arith.constant -1.000000e+02 : f32
    %16 = vector.broadcast %cst_10 : f32 to vector<8x128xf32>
    %17 = arith.maximumf %15, %16 : vector<8x128xf32>
    %cst_11 = arith.constant 0.000000e+00 : f32
    %18 = vector.broadcast %cst_11 : f32 to vector<8x128xf32>
    %19 = arith.subf %18, %17 : vector<8x128xf32>
    %cst_12 = arith.constant 1.000000e+00 : f32
    %20 = vector.broadcast %cst_12 : f32 to vector<8x128xf32>
    %21 = arith.subf %20, %6 : vector<8x128xf32>
    %22 = arith.select %11, %21, %6 : vector<8x128xi1>, vector<8x128xf32>
    %23 = math.log %22 : vector<8x128xf32>
    %cst_13 = arith.constant -1.000000e+02 : f32
    %24 = vector.broadcast %cst_13 : f32 to vector<8x128xf32>
    %25 = arith.maximumf %23, %24 : vector<8x128xf32>
    %cst_14 = arith.constant 0.000000e+00 : f32
    %26 = vector.broadcast %cst_14 : f32 to vector<8x128xf32>
    %27 = arith.subf %26, %25 : vector<8x128xf32>
    %cst_15 = arith.constant 1.000000e+00 : f32
    %cst_16 = arith.constant 2.000000e+00 : f32
    %28 = vector.broadcast %cst_15 : f32 to vector<8x128xf32>
    %29 = vector.broadcast %cst_16 : f32 to vector<8x128xf32>
    %30 = arith.select %11, %28, %29 : vector<8x128xi1>, vector<8x128xf32>
    %cst_17 = arith.constant 0.699999988 : f32
    %31 = vector.broadcast %cst_17 : f32 to vector<8x128xf32>
    %32 = arith.mulf %31, %9 : vector<8x128xf32>
    %33 = arith.mulf %30, %27 : vector<8x128xf32>
    %34 = arith.addf %19, %33 : vector<8x128xf32>
    %cst_18 = arith.constant 1.500000e-01 : f32
    %35 = vector.broadcast %cst_18 : f32 to vector<8x128xf32>
    %36 = arith.mulf %35, %34 : vector<8x128xf32>
    %37 = arith.addf %32, %36 : vector<8x128xf32>
    %38 = tpu.iota {dimensions = array<i32: 0>} : vector<8x128xi32>
    %39 = tpu.iota {dimensions = array<i32: 1>} : vector<8x128xi32>
    %c8_i32 = arith.constant 8 : i32
    %40 = arith.muli %arg0, %c8_i32 : i32
    %41 = vector.broadcast %40 : i32 to vector<8x128xi32>
    %42 = arith.addi %41, %38 : vector<8x128xi32>
    %c128_i32 = arith.constant 128 : i32
    %43 = vector.broadcast %c128_i32 : i32 to vector<8x128xi32>
    %44 = arith.muli %42, %43 : vector<8x128xi32>
    %45 = arith.addi %44, %39 : vector<8x128xi32>
    %46 = vector.broadcast %3 : i32 to vector<8x128xi32>
    %47 = arith.cmpi slt, %45, %46 : vector<8x128xi32>
    %cst_19 = arith.constant 0.000000e+00 : f32
    %48 = vector.broadcast %cst_19 : f32 to vector<8x128xf32>
    %49 = arith.select %47, %37, %48 : vector<8x128xi1>, vector<8x128xf32>
    %50 = vector.shape_cast %49 : vector<8x128xf32> to vector<1x8x128xf32>
    %cst_20 = arith.constant dense<0.000000e+00> : vector<8x128xf32>
    %51 = vector.multi_reduction <add>, %50, %cst_20 [0] : vector<1x8x128xf32> to vector<8x128xf32>
    %c0_21 = arith.constant 0 : index
    %c0_22 = arith.constant 0 : index
    %52 = vector.load %arg7[%c0_21, %c0_22] : memref<8x128xf32, #tpu.memory_space<vmem>>, vector<8x128xf32>
    %53 = arith.addf %52, %51 : vector<8x128xf32>
    %c0_23 = arith.constant 0 : index
    %c0_24 = arith.constant 0 : index
    %54 = vector.load %arg7[%c0_23, %c0_24] : memref<8x128xf32, #tpu.memory_space<vmem>>, vector<8x128xf32>
    tpu.vector_store %arg7[%c0_23, %c0_24], %53 {strides = array<i32>} : memref<8x128xf32, #tpu.memory_space<vmem>>, vector<8x128xf32>,
    %c0_i32_25 = arith.constant 0 : i32
    %55 = arith.cmpi eq, %arg0, %c0_i32_25 : i32
    %56 = arith.extui %55 : i1 to i32
    %c0_i32_26 = arith.constant 0 : i32
    %57 = arith.cmpi ne, %56, %c0_i32_26 : i32
    scf.if %57 {
      %c0_27 = arith.constant 0 : index
      %c0_28 = arith.constant 0 : index
      %58 = vector.load %arg7[%c0_27, %c0_28] : memref<8x128xf32, #tpu.memory_space<vmem>>, vector<8x128xf32>
      %59 = vector.shape_cast %58 : vector<8x128xf32> to vector<1x8x128xf32>
      %cst_29 = arith.constant dense<0.000000e+00> : vector<1xf32>
      %60 = vector.multi_reduction <add>, %59, %cst_29 [1, 2] : vector<1x8x128xf32> to vector<1xf32>
      %61 = vector.shape_cast %60 : vector<1xf32> to vector<1x1x1xf32>
      %62 = vector.extract %61[0, 0, 0] : f32 from vector<1x1x1xf32>
      %63 = arith.sitofp %3 : i32 to f32
      %64 = arith.divf %62, %63 : f32
      %c0_30 = arith.constant 0 : index
      %c0_31 = arith.constant 0 : index
      %65 = memref.load %arg6[%c0_30, %c0_31] : memref<1x1xf32, #tpu.memory_space<smem>>
      memref.store %64, %arg6[%c0_30, %c0_31] : memref<1x1xf32, #tpu.memory_space<smem>>
    } else {
    }
    return
  }
  func.func @transform_0(%arg0: i32, %arg1: memref<1xi32, #tpu.memory_space<smem>>) -> (i32, i32) {
    %c0_i32 = arith.constant 0 : i32
    %c0_i32_0 = arith.constant 0 : i32
    return %arg0, %c0_i32 : i32, i32
  }
  func.func @transform_1(%arg0: i32, %arg1: memref<1xi32, #tpu.memory_space<smem>>) -> (i32, i32) {
    %c0_i32 = arith.constant 0 : i32
    %c0_i32_0 = arith.constant 0 : i32
    return %arg0, %c0_i32 : i32, i32
  }
  func.func @transform_2(%arg0: i32, %arg1: memref<1xi32, #tpu.memory_space<smem>>) -> (i32, i32) {
    %c0_i32 = arith.constant 0 : i32
    %c0_i32_0 = arith.constant 0 : i32
    return %arg0, %c0_i32 : i32, i32
  }
  func.func @transform_3(%arg0: i32, %arg1: memref<1xi32, #tpu.memory_space<smem>>) -> (i32, i32) {
    %c0_i32 = arith.constant 0 : i32
    %c0_i32_0 = arith.constant 0 : i32
    return %arg0, %c0_i32 : i32, i32
  }
  func.func @transform_4(%arg0: i32, %arg1: memref<1xi32, #tpu.memory_space<smem>>) -> (i32, i32) {
    %c0_i32 = arith.constant 0 : i32
    %c0_i32_0 = arith.constant 0 : i32
    %c0_i32_1 = arith.constant 0 : i32
    return %c0_i32, %c0_i32_0 : i32, i32
  }
}

</mosaic_0001>

<bundles_post_ra>
// kernel: tpu_custom_call.1
= control target key start
LH: loop header
LB: loop body
LE: loop exit
PB: predicated region body
PF: predicated region fallthrough
CT: control target
= control target key end

     0   :  { %s189_s0 = inlined_call_operand.<no memory space> [shape: s32[1], index: 0, kind: input, shape index: {}]   ;;  %s190_s1 = inlined_call_operand.vmem [shape: f32[2,128], index: 1, kind: input, shape index: {}]   ;;  %s191_s2 = inlined_call_operand.vmem [shape: f32[2,128], index: 2, kind: input, shape index: {}]   ;;  %s192_s3 = inlined_call_operand.vmem [shape: f32[2,128], index: 3, kind: input, shape index: {}]   ;;  %s193_s4 = inlined_call_operand.vmem [shape: f32[2,128], index: 4, kind: input, shape index: {}]   ;;  %s194_s5 = inlined_call_operand.hbm [shape: f32[1,1], index: 5, kind: output, shape index: {}]  }
   0x1   :  { %v27_v0 = vld [vmem:[%s191_s2] sm:$0xff] }
   0x2   :  { %v28_v1 = vld [vmem:[%s192_s3] sm:$0xff]  ;;  %v33_v3 = vsub.f32 1.0, %v27_v0 }
   0x3   :  { %v29_v2 = vld [vmem:[%s193_s4] sm:$0xff]  ;;  %v39_v4 = vsub.f32 1.0, %v28_v1 }
   0x4   :  { %11 = vsyncpa [#allocation6], 0  ;;  %vm32_vm0 = vcmp.ge.f32.partialorder %v29_v2, 1.5  ;;  %v51_v7 = vlaneseq  ;;  %v26_v8 = vld [vmem:[%s190_s1] sm:$0xff]  ;;  %v124_v17 = vmov 2.0   ;;  %v60_v28 = vstv %s189_s0  ;;  %s80_s26 = scvt.s32.f32 %s189_s0  ;;  %s112_s0 = scalar_lea.hbm %s194_s5, 16 }
   0x5   :  { %v34_v5 = vsel %vm32_vm0, %v27_v0, %v33_v3  ;;  %v40_v6 = vsel %vm32_vm0, %v39_v4, %v28_v1  ;;  %v30_v13 = vsub.f32 %v26_v8, %v29_v2  ;;  %v45_v18 = vsel %vm32_vm0, 1.0, %v124_v17  ;;  %p113_p0 = scmp.ne.s32.totalorder %s194_s5, %s112_s0  ;;  %p116_p1 = scmp.lt.u32.totalorder %s112_s0, %s194_s5 }
   0x6   :  { %106 = vlog2.f32 %v34_v5  ;;  %v52_v12 = vshrl.u32 %v51_v7, 7  ;;  %v54_v19 = vand.u32 127, %v51_v7  ;;  %v81_v32 = vstv %s80_s26 }
   0x7   :  { %108 = vlog2.f32 %v40_v6  ;;  %v31_v21 = vmul.f32 %v30_v13, %v30_v13  ;;  %p118_p2 = pnand %p116_p1, %p113_p0 }
   0x8   :  { %v58_v20 = vmul.u32 128, %v52_v12  ;;  %110 = vrcp.f32 %v81_v32 }
   0x9   :  { %v46_v26 = vmul.f32 0.7, %v31_v21 }
   0xa   :  { %v59_v25 = vadd.s32 %v58_v20, %v54_v19 }
   0xc   :  { %vm61_vm1 = vcmp.lt.s32.totalorder %v59_v25, %v60_v28 }
  0x10   :  { %v107_v9 = vpop.eup %106 }
  0x11   :  { %v109_v10 = vpop.eup %108  ;;  %v36_v11 = vmul.f32 0.6931472, %v107_v9 }
  0x12   :  { %v42_v14 = vmul.f32 0.6931472, %v109_v10  ;;  %v111_v39 = vpop.eup %110 }
  0x13   :  { %v37_v15 = vmax.f32 %v36_v11, -100.0 }
  0x14   :  { %v43_v16 = vmax.f32 %v42_v14, -100.0 }
  0x15   :  { %v38_v22 = vsub.f32 0.0, %v37_v15 }
  0x16   :  { %v44_v23 = vsub.f32 0.0, %v43_v16 }
  0x18   :  { %v47_v24 = vmul.f32 %v45_v18, %v44_v23 }
  0x1a   :  { %v48_v27 = vadd.f32 %v47_v24, %v38_v22 }
  0x1c   :  { %v49_v29 = vmul.f32 0.15, %v48_v27 }
  0x1e   :  { %v50_v30 = vadd.f32 %v49_v29, %v46_v26 }
  0x20   :  { %v62_v31 = vsel %vm61_vm1, %v50_v30, 0.0 }
  0x21   :  { %71 = vadd.xlane.f32.xlu0 %v62_v31 }
  0xae   :  { %v72_v33 = vpop.xlane.xlu0 %71 }
  0xaf   :  { %v73_v34 = vrot.slane %v72_v33, 4 }
  0xb1   :  { %v74_v35 = vadd.f32 %v73_v34, %v72_v33 }
  0xb3   :  { %v75_v36 = vrot.slane %v74_v35, 2 }
  0xb5   :  { %v76_v37 = vadd.f32 %v75_v36, %v74_v35 }
  0xb7   :  { %v77_v38 = vrot.slane %v76_v37, 1 }
  0xb9   :  { %v78_v40 = vadd.f32 %v77_v38, %v76_v37 }
  0xbb   :  { %100 = vpush %v78_v40 }
  0xbc   :  { %102 = vpush %v111_v39 }
  0xec   :  { %s101_s27 = spop %100 }
  0xed   :  { %s103_s28 = spop %102 }
  0xee   :  { %s84_s29 = smul.f32 %s103_s28, %s101_s27 }
  0xf0   :  { %86 = sst [smem:[#allocation5]] %s84_s29 }
  0xf1   :  { %121 = shalt.err (!%p118_p2)
}
  0xf2   :  { %s125_s11 = smov [#allocation5]  }
  0xf3   :  { %94 = dma.smem_to_hbm %s125_s11, 16, %s194_s5, [#allocation6]  }
  0xf4   :  { %122 = dma.done.wait [#allocation6], 16  }
  0xf5   :  { %123 = vsyncadd [#allocation6], 4294967280 }
  0xf6   :  { %98 = sfence }
  0xf7   :  { %99 = vsyncpa [#allocation6], 1 }

</bundles_post_ra>
